<compile_context>
chip_gen: v5e
topology: v5e:2x2
jax: 0.10.0
libtpu: 0.0.40
codegen_flags: <defaults>
</compile_context>

<pallas_src>
import functools

import jax
import jax.numpy as jnp
from jax.experimental import pallas as pl
from jax.experimental.pallas import tpu as pltpu

_LANE = 128
_SUB = 8


def _spatial_attention_kernel(x_ref, w1_ref, b1_ref, w2_ref, b2_ref, o_ref):
    """One grid step: BN images x TS*128 spatial positions.

    x_ref : (BN, C, TS, 128) VMEM -- dense (sublane, lane) spatial slabs
    w1_ref: (Ch, C)          SMEM -- conv1 weight (1x1 kernel dims squeezed)
    b1_ref: (Ch,)            SMEM -- conv1 bias
    w2_ref: (Ch,)            SMEM -- conv2 weight
    b2_ref: (1,)             SMEM -- conv2 bias
    o_ref : (BN, 1, TS, 128) VMEM -- sigmoid attention map
    """
    BN, C, _, _ = x_ref.shape
    Ch = w1_ref.shape[0]

    for b in range(BN):                       # BN is small & static -> unrolled
        # Load each channel slab once; all arithmetic is dense (TS,128) VPU FMAs.
        xs = [x_ref[b, c, :, :].astype(jnp.float32) for c in range(C)]
        y = None
        for m in range(Ch):                   # tiny static channel loops
            h = xs[0] * w1_ref[m, 0] + b1_ref[m]
            for c in range(1, C):
                h = h + xs[c] * w1_ref[m, c]
            h = jnp.maximum(h, 0.0)           # ReLU
            t = h * w2_ref[m]
            y = t if y is None else y + t
        y = y + b2_ref[0]
        # sigmoid(y) = 1 / (1 + exp(-y)); exp and rcp both go to the EUP slot.
        attn = pl.reciprocal(1.0 + jnp.exp(-y), approx=True)
        o_ref[b, 0, :, :] = attn.astype(o_ref.dtype)


def _choose_tiling(N, C, S, target_px, vmem_budget_bytes):
    """Pick (BN images per step, TS sublane-rows per step); TS multiple of 8."""
    rows_target = max(_SUB, (target_px // _LANE) // _SUB * _SUB)
    # Double-buffered working set per row: 2 * (C inputs + 1 output) * 128 * 4B.
    bytes_per_row = 2 * (C + 1) * _LANE * 4
    rows_cap = max(_SUB, (vmem_budget_bytes // bytes_per_row) // _SUB * _SUB)
    rows_max = min(rows_target, rows_cap)
    if S > rows_max:
        return 1, rows_max
    # Whole (padded) image fits in one step: batch several images per step so
    # each grid step moves a reasonable amount of data.
    bn = max(1, min(N, rows_max // S))
    while N % bn:                              # keep BN an exact divisor of N
        bn -= 1
    if bn == N and N > 1:                      # keep >= 2 grid steps (v7x: 2 TCs)
        bn = max(1, bn // 2)
        while N % bn:
            bn -= 1
    return bn, S


@functools.partial(jax.jit, static_argnames=("target_tile_px",))
def spatial_attention(x_nchw, w1, b1, w2, b2, *, target_tile_px=131072):
    """x_nchw: (N, C, H, W) -> (N, 1, H, W) sigmoid attention map.

    w1: (C//2, C), b1: (C//2,), w2: (C//2,), b2: (1,)  (PyTorch 1x1-conv
    weights with trailing kernel dims squeezed out).
    """
    N, C, H, W = x_nchw.shape
    Ch = w1.shape[0]
    HW = H * W

    # Tiny parameters live in SMEM as f32 scalars.
    w1 = w1.astype(jnp.float32)
    b1 = b1.astype(jnp.float32)
    w2 = w2.astype(jnp.float32)
    b2 = b2.astype(jnp.float32)

    # Free reshape to (N, C, HW); pad HW to a multiple of 8*128 so the spatial
    # axis packs densely onto (sublane, lane) vreg tiles (no full-extent
    # fallback block, no VMEM blowup for unaligned HW).
    hw_pad = -HW % (_SUB * _LANE)
    x3 = x_nchw.reshape(N, C, HW)
    if hw_pad:
        x3 = jnp.pad(x3, ((0, 0), (0, 0), (0, hw_pad)))
    HWp = HW + hw_pad
    S = HWp // _LANE
    x4 = x3.reshape(N, C, S, _LANE)

    BN, TS = _choose_tiling(N, C, S, target_tile_px, vmem_budget_bytes=12 << 20)
    grid = (N // BN, pl.cdiv(S, TS))

    cost = pl.CostEstimate(
        flops=2 * N * HWp * (C * Ch + Ch),
        transcendentals=N * HWp,                      # one exp (+rcp) per pixel
        bytes_accessed=(x4.size + N * HWp) * x4.dtype.itemsize
        + (w1.size + b1.size + w2.size + b2.size) * 4,
    )

    smem = pltpu.MemorySpace.SMEM
    out4 = pl.pallas_call(
        _spatial_attention_kernel,
        out_shape=jax.ShapeDtypeStruct((N, 1, S, _LANE), x_nchw.dtype),
        grid=grid,
        in_specs=[
            # activation block: BN images, all C channels, TS rows of 128 px
            pl.BlockSpec((BN, C, TS, _LANE), lambda n, j: (n, 0, j, 0)),
            # tiny parameters: whole arrays resident in SMEM (scalar reads)
            pl.BlockSpec(memory_space=smem),
            pl.BlockSpec(memory_space=smem),
            pl.BlockSpec(memory_space=smem),
            pl.BlockSpec(memory_space=smem),
        ],
        out_specs=pl.BlockSpec((BN, 1, TS, _LANE), lambda n, j: (n, 0, j, 0)),
        compiler_params=pltpu.CompilerParams(
            dimension_semantics=("parallel", "parallel"),
        ),
        cost_estimate=cost,
    )(x4, w1, b1, w2, b2)

    # Free reshapes back; drop the spatial padding.
    return out4.reshape(N, 1, HWp)[:, :, :HW].reshape(N, 1, H, W)


def init_params(key, in_channels, dtype=jnp.float32):
    """Synthetic parameters matching nn.Conv2d(..., kernel_size=1) shapes."""
    mid = in_channels // 2
    k1, k2, k3, k4 = jax.random.split(key, 4)
    w1 = jax.random.normal(k1, (mid, in_channels), dtype) * 0.1
    b1 = jax.random.normal(k2, (mid,), dtype) * 0.1
    w2 = jax.random.normal(k3, (mid,), dtype) * 0.1
    b2 = jax.random.normal(k4, (1,), dtype) * 0.1
    return w1, b1, w2, b2


def _reference(x_nchw, w1, b1, w2, b2):
    # Pure-JAX reference mirroring the PyTorch forward.
    h = jnp.einsum("nchw,mc->nmhw", x_nchw, w1) + b1[None, :, None, None]
    h = jnp.maximum(h, 0.0)
    y = jnp.einsum("nmhw,m->nhw", h, w2)[:, None, :, :] + b2[0]
    return jax.nn.sigmoid(y)


if __name__ == "__main__":
    key = jax.random.PRNGKey(0)
    kx, kp = jax.random.split(key)

    # Small shapes consistent with the module: batch=2, channels=4, spatial=16.
    N, C, H, W = 2, 4, 16, 16
    x = jax.random.normal(kx, (N, C, H, W), jnp.float32)
    w1, b1, w2, b2 = init_params(kp, C)

    out = spatial_attention(x, w1, b1, w2, b2)
    out = jax.block_until_ready(out)

    ref = _reference(x, w1, b1, w2, b2)
    assert out.shape == (N, 1, H, W), out.shape
    # Slightly looser tolerance: sigmoid uses the EUP approximate reciprocal.
    assert jnp.allclose(out, ref, atol=2e-3, rtol=2e-3), "mismatch vs reference"

    print("KERNEL_OK")
</pallas_src>

<mosaic_0001>
module attributes {stable_mosaic.version = 11 : i64} {
  func.func @_spatial_attention_kernel(%arg0: i32, %arg1: i32, %arg2: memref<1x4x8x128xf32, #tpu.memory_space<vmem>>, %arg3: memref<2x4xf32, #tpu.memory_space<smem>>, %arg4: memref<2xf32, #tpu.memory_space<smem>>, %arg5: memref<2xf32, #tpu.memory_space<smem>>, %arg6: memref<1xf32, #tpu.memory_space<smem>>, %arg7: memref<1x1x8x128xf32, #tpu.memory_space<vmem>>) attributes {dimension_semantics = [#tpu.dimension_semantics<parallel>, #tpu.dimension_semantics<parallel>], iteration_bounds = array<i64: 2, 1>, scalar_prefetch = 0 : i64, scratch_operands = 0 : i64, tpu.core_type = #tpu.core_type<tc>, window_params = [{transform_indices = @transform_0, window_bounds = array<i64: 1, 4, 8, 128>}, {transform_indices = @transform_1, window_bounds = array<i64: 2, 4>}, {transform_indices = @transform_2, window_bounds = array<i64: 2>}, {transform_indices = @transform_3, window_bounds = array<i64: 2>}, {transform_indices = @transform_4, window_bounds = array<i64: 1>}, {transform_indices = @transform_5, window_bounds = array<i64: 1, 1, 8, 128>}]} {
    %c0 = arith.constant 0 : index
    %c0_0 = arith.constant 0 : index
    %c0_1 = arith.constant 0 : index
    %c0_2 = arith.constant 0 : index
    %0 = vector.load %arg2[%c0, %c0_0, %c0_1, %c0_2] : memref<1x4x8x128xf32, #tpu.memory_space<vmem>>, vector<1x1x8x128xf32>
    %1 = vector.shape_cast %0 : vector<1x1x8x128xf32> to vector<8x128xf32>
    %c0_3 = arith.constant 0 : index
    %c1 = arith.constant 1 : index
    %c0_4 = arith.constant 0 : index
    %c0_5 = arith.constant 0 : index
    %2 = vector.load %arg2[%c0_3, %c1, %c0_4, %c0_5] : memref<1x4x8x128xf32, #tpu.memory_space<vmem>>, vector<1x1x8x128xf32>
    %3 = vector.shape_cast %2 : vector<1x1x8x128xf32> to vector<8x128xf32>
    %c0_6 = arith.constant 0 : index
    %c2 = arith.constant 2 : index
    %c0_7 = arith.constant 0 : index
    %c0_8 = arith.constant 0 : index
    %4 = vector.load %arg2[%c0_6, %c2, %c0_7, %c0_8] : memref<1x4x8x128xf32, #tpu.memory_space<vmem>>, vector<1x1x8x128xf32>
    %5 = vector.shape_cast %4 : vector<1x1x8x128xf32> to vector<8x128xf32>
    %c0_9 = arith.constant 0 : index
    %c3 = arith.constant 3 : index
    %c0_10 = arith.constant 0 : index
    %c0_11 = arith.constant 0 : index
    %6 = vector.load %arg2[%c0_9, %c3, %c0_10, %c0_11] : memref<1x4x8x128xf32, #tpu.memory_space<vmem>>, vector<1x1x8x128xf32>
    %7 = vector.shape_cast %6 : vector<1x1x8x128xf32> to vector<8x128xf32>
    %c0_12 = arith.constant 0 : index
    %c0_13 = arith.constant 0 : index
    %8 = memref.load %arg3[%c0_12, %c0_13] : memref<2x4xf32, #tpu.memory_space<smem>>
    %9 = vector.broadcast %8 : f32 to vector<8x128xf32>
    %10 = arith.mulf %1, %9 : vector<8x128xf32>
    %c0_14 = arith.constant 0 : index
    %11 = memref.load %arg4[%c0_14] : memref<2xf32, #tpu.memory_space<smem>>
    %12 = vector.broadcast %11 : f32 to vector<8x128xf32>
    %13 = arith.addf %10, %12 : vector<8x128xf32>
    %c0_15 = arith.constant 0 : index
    %c1_16 = arith.constant 1 : index
    %14 = memref.load %arg3[%c0_15, %c1_16] : memref<2x4xf32, #tpu.memory_space<smem>>
    %15 = vector.broadcast %14 : f32 to vector<8x128xf32>
    %16 = arith.mulf %3, %15 : vector<8x128xf32>
    %17 = arith.addf %13, %16 : vector<8x128xf32>
    %c0_17 = arith.constant 0 : index
    %c2_18 = arith.constant 2 : index
    %18 = memref.load %arg3[%c0_17, %c2_18] : memref<2x4xf32, #tpu.memory_space<smem>>
    %19 = vector.broadcast %18 : f32 to vector<8x128xf32>
    %20 = arith.mulf %5, %19 : vector<8x128xf32>
    %21 = arith.addf %17, %20 : vector<8x128xf32>
    %c0_19 = arith.constant 0 : index
    %c3_20 = arith.constant 3 : index
    %22 = memref.load %arg3[%c0_19, %c3_20] : memref<2x4xf32, #tpu.memory_space<smem>>
    %23 = vector.broadcast %22 : f32 to vector<8x128xf32>
    %24 = arith.mulf %7, %23 : vector<8x128xf32>
    %25 = arith.addf %21, %24 : vector<8x128xf32>
    %cst = arith.constant 0.000000e+00 : f32
    %26 = vector.broadcast %cst : f32 to vector<8x128xf32>
    %27 = arith.maximumf %25, %26 : vector<8x128xf32>
    %c0_21 = arith.constant 0 : index
    %28 = memref.load %arg5[%c0_21] : memref<2xf32, #tpu.memory_space<smem>>
    %29 = vector.broadcast %28 : f32 to vector<8x128xf32>
    %30 = arith.mulf %27, %29 : vector<8x128xf32>
    %c1_22 = arith.constant 1 : index
    %c0_23 = arith.constant 0 : index
    %31 = memref.load %arg3[%c1_22, %c0_23] : memref<2x4xf32, #tpu.memory_space<smem>>
    %32 = vector.broadcast %31 : f32 to vector<8x128xf32>
    %33 = arith.mulf %1, %32 : vector<8x128xf32>
    %c1_24 = arith.constant 1 : index
    %34 = memref.load %arg4[%c1_24] : memref<2xf32, #tpu.memory_space<smem>>
    %35 = vector.broadcast %34 : f32 to vector<8x128xf32>
    %36 = arith.addf %33, %35 : vector<8x128xf32>
    %c1_25 = arith.constant 1 : index
    %c1_26 = arith.constant 1 : index
    %37 = memref.load %arg3[%c1_25, %c1_26] : memref<2x4xf32, #tpu.memory_space<smem>>
    %38 = vector.broadcast %37 : f32 to vector<8x128xf32>
    %39 = arith.mulf %3, %38 : vector<8x128xf32>
    %40 = arith.addf %36, %39 : vector<8x128xf32>
    %c1_27 = arith.constant 1 : index
    %c2_28 = arith.constant 2 : index
    %41 = memref.load %arg3[%c1_27, %c2_28] : memref<2x4xf32, #tpu.memory_space<smem>>
    %42 = vector.broadcast %41 : f32 to vector<8x128xf32>
    %43 = arith.mulf %5, %42 : vector<8x128xf32>
    %44 = arith.addf %40, %43 : vector<8x128xf32>
    %c1_29 = arith.constant 1 : index
    %c3_30 = arith.constant 3 : index
    %45 = memref.load %arg3[%c1_29, %c3_30] : memref<2x4xf32, #tpu.memory_space<smem>>
    %46 = vector.broadcast %45 : f32 to vector<8x128xf32>
    %47 = arith.mulf %7, %46 : vector<8x128xf32>
    %48 = arith.addf %44, %47 : vector<8x128xf32>
    %cst_31 = arith.constant 0.000000e+00 : f32
    %49 = vector.broadcast %cst_31 : f32 to vector<8x128xf32>
    %50 = arith.maximumf %48, %49 : vector<8x128xf32>
    %c1_32 = arith.constant 1 : index
    %51 = memref.load %arg5[%c1_32] : memref<2xf32, #tpu.memory_space<smem>>
    %52 = vector.broadcast %51 : f32 to vector<8x128xf32>
    %53 = arith.mulf %50, %52 : vector<8x128xf32>
    %54 = arith.addf %30, %53 : vector<8x128xf32>
    %c0_33 = arith.constant 0 : index
    %55 = memref.load %arg6[%c0_33] : memref<1xf32, #tpu.memory_space<smem>>
    %56 = vector.broadcast %55 : f32 to vector<8x128xf32>
    %57 = arith.addf %54, %56 : vector<8x128xf32>
    %cst_34 = arith.constant 0.000000e+00 : f32
    %58 = vector.broadcast %cst_34 : f32 to vector<8x128xf32>
    %59 = arith.subf %58, %57 : vector<8x128xf32>
    %60 = math.exp %59 : vector<8x128xf32>
    %cst_35 = arith.constant 1.000000e+00 : f32
    %61 = vector.broadcast %cst_35 : f32 to vector<8x128xf32>
    %62 = arith.addf %61, %60 : vector<8x128xf32>
    %63 = tpu.reciprocal %62 {approx = true} : vector<8x128xf32> -> vector<8x128xf32>
    %c0_36 = arith.constant 0 : index
    %c0_37 = arith.constant 0 : index
    %c0_38 = arith.constant 0 : index
    %c0_39 = arith.constant 0 : index
    %64 = vector.load %arg7[%c0_36, %c0_37, %c0_38, %c0_39] : memref<1x1x8x128xf32, #tpu.memory_space<vmem>>, vector<1x1x8x128xf32>
    %65 = vector.shape_cast %64 : vector<1x1x8x128xf32> to vector<8x128xf32>
    %66 = vector.shape_cast %63 : vector<8x128xf32> to vector<1x1x8x128xf32>
    tpu.vector_store %arg7[%c0_36, %c0_37, %c0_38, %c0_39], %66 {strides = array<i32>} : memref<1x1x8x128xf32, #tpu.memory_space<vmem>>, vector<1x1x8x128xf32>,
    return
  }
  func.func @transform_0(%arg0: i32, %arg1: i32) -> (i32, i32, i32, i32) {
    %c0_i32 = arith.constant 0 : i32
    %c0_i32_0 = arith.constant 0 : i32
    %c0_i32_1 = arith.constant 0 : i32
    return %arg0, %c0_i32, %arg1, %c0_i32_0 : i32, i32, i32, i32
  }
  func.func @transform_1(%arg0: i32, %arg1: i32) -> (i32, i32) {
    %c0_i32 = arith.constant 0 : i32
    %c0_i32_0 = arith.constant 0 : i32
    %c0_i32_1 = arith.constant 0 : i32
    return %c0_i32, %c0_i32_0 : i32, i32
  }
  func.func @transform_2(%arg0: i32, %arg1: i32) -> i32 {
    %c0_i32 = arith.constant 0 : i32
    %c0_i32_0 = arith.constant 0 : i32
    return %c0_i32 : i32
  }
  func.func @transform_3(%arg0: i32, %arg1: i32) -> i32 {
    %c0_i32 = arith.constant 0 : i32
    %c0_i32_0 = arith.constant 0 : i32
    return %c0_i32 : i32
  }
  func.func @transform_4(%arg0: i32, %arg1: i32) -> i32 {
    %c0_i32 = arith.constant 0 : i32
    %c0_i32_0 = arith.constant 0 : i32
    return %c0_i32 : i32
  }
  func.func @transform_5(%arg0: i32, %arg1: i32) -> (i32, i32, i32, i32) {
    %c0_i32 = arith.constant 0 : i32
    %c0_i32_0 = arith.constant 0 : i32
    %c0_i32_1 = arith.constant 0 : i32
    return %arg0, %c0_i32, %arg1, %c0_i32_0 : i32, i32, i32, i32
  }
}

</mosaic_0001>

<bundles_post_ra>
// kernel: spatial_attention.1
= control target key start
LH: loop header
LB: loop body
LE: loop exit
PB: predicated region body
PF: predicated region fallthrough
CT: control target
= control target key end

     0   :  { %s738_s0 = inlined_call_operand.vmem [shape: f32[2,4,8,128], index: 0, kind: input, shape index: {}]   ;;  %s739_s1 = inlined_call_operand.vmem [shape: f32[2,4], index: 1, kind: input, shape index: {}]   ;;  %s740_s2 = inlined_call_operand.vmem [shape: f32[2], index: 2, kind: input, shape index: {}]   ;;  %s741_s3 = inlined_call_operand.vmem [shape: f32[2], index: 3, kind: input, shape index: {}]   ;;  %s742_s4 = inlined_call_operand.<no memory space> [shape: f32[1], index: 4, kind: input, shape index: {}]   ;;  %s743_s5 = inlined_call_operand.vmem [shape: f32[2,1,8,128], index: 5, kind: output, shape index: {}]  }
   0x1   :  { %10 = sst [smem:[#allocation2]] %s742_s4 }
   0x2   :  { %11 = vsyncpa [#allocation4], 0 }
   0x3   :  { %12 = vsyncpa [#allocation6], 0  ;;  %s665_s20 = smov 0   ;;  %s667_s21 = smov 0  }
   0x4   :  { %s669_s22 = smov 0  }
   0x5 LB: > { %s197_s24 = sshll.u32 %s740_s2, 4  ;;  %s464_s25 = sadd.s32 4294967295, %s627_s22   ;;  %s627_s22 = sphi %s669_s22, %s18_s22   ;;  %s623_s21 = sphi %s667_s21, %s747_s21   ;;  %s619_s20 = sphi %s665_s20, %s746_s20   ;;  %s198_s24 = int_to_ptr.vmem [resolvable:$true] %s197_s24 }
   0x6   : > { %p466_p0 = scmp.ge.s32.totalorder %s627_s22, 1  ;;  %p175_p1 = scmp.lt.s32.totalorder %s627_s22, 3 }
   0x7   : > { %p686_p2 = scmp.eq.s32.totalorder %s464_s25, 0  ;;  %s30_s28 = sadd.s32 1, %s623_s21 }
   0x8   : > { %p690_p3 = pnand %p466_p0, %p175_p1  ;;  %s187_s6 = sshll.u32 %s739_s1, 4  ;;  %s188_s6 = int_to_ptr.vmem [resolvable:$true] %s187_s6 }
   0x9   : > { %p32_p6 = scmp.ge.s32.totalorder %s30_s28, 2  ;;  %s207_s9 = sshll.u32 %s741_s3, 4  ;;  %s208_s9 = int_to_ptr.vmem [resolvable:$true] %s207_s9 }
   0xa   : > { %p505_p4 = pneg %p690_p3  ;;  %s629_s10 = smov [#allocation5]  }
   0xb   : > { %s749_s28 = smov (%p32_p6, %s30_s28), 0  ;;  %s630_s11 = smov [#allocation3]  }
   0xc   : > { %p506_p5 = pnand %p686_p2, %p505_p4  ;;  %s631_s12 = smov [#allocation7]  }
   0xd   : > { %234 = sbr.rel (%p690_p3) target bundleno = 74 (0x4a), region = 40 }
   0xe   : > { %511 = dma.vmem_to_smem (!%p506_p5), %s198_s24, 16, %s629_s10, [#allocation6]  }
   0xf   : > { %508 = dma.vmem_to_smem (!%p506_p5), %s188_s6, 32, %s630_s11, [#allocation4]  }
  0x10   : > { %514 = dma.vmem_to_smem (!%p506_p5), %s208_s9, 16, %s631_s12, [#allocation6]  }
  0x12   : > { %610 = dma.done.wait (%p686_p2), [#allocation4], 32  }
  0x13   : > { %612 = vsyncadd (%p686_p2), [#allocation4], 4294967264 }
  0x14   : > { %614 = dma.done.wait (%p686_p2), [#allocation6], 32  }
  0x15   : > { %616 = vsyncadd (%p686_p2), [#allocation6], 4294967264 }
  0x16   : > { %251 = sfence }
  0x17   : > { %p279_p7 = scmp.lt.s32.totalorder %s619_s20, 1  ;;  %s301_s13 = sld [smem:[#allocation3]] }
  0x18   : > { %s304_s14 = sld [smem:[#allocation5]] }
  0x19   : > { %s751_s20 = smov (!%p279_p7, %s619_s20), 1  ;;  %s481_s15 = sld [smem:[#allocation3 + $0x1]] }
  0x1a   : > { %s492_s16 = sshll.u32 %s751_s20, 5  ;;  %s482_s4 = sld [smem:[#allocation3 + $0x2]] }
  0x1b   : > { %s286_s19 = scalar_lea.vmem %s738_s0, %s492_s16  ;;  %s483_s23 = sld [smem:[#allocation3 + $0x3]] }
  0x1c   : > { %v294_v0 = vld [vmem:[%s286_s19] sm:$0xff]  ;;  %v478_v2 = vld [vmem:[%s286_s19 + $0x8] sm:$0xff]  ;;  %s484_s24 = sld [smem:[#allocation3 + $0x80]]  ;;  %v479_v7 = vld [vmem:[%s286_s19 + $0x10] sm:$0xff]  ;;  %s477_s8 = sshll.u32 %s751_s20, 3 }
  0x1d   : > { %v302_v1 = vstv %s301_s13  ;;  %s485_s25 = sld [smem:[#allocation5 + $0x1]]  ;;  %v480_v9 = vld [vmem:[%s286_s19 + $0x18] sm:$0xff]  ;;  %s293_s11 = scalar_lea.vmem %s743_s5, %s477_s8 }
  0x1e   : > { %v303_v3 = vmul.f32 %v302_v1, %v294_v0  ;;  %v305_v4 = vstv %s304_s14  ;;  %s486_s26 = sld [smem:[#allocation3 + $0x81]] }
  0x1f   : > { %v308_v6 = vstv %s481_s15  ;;  %s487_s27 = sld [smem:[#allocation3 + $0x82]] }
  0x20   : > { %v306_v5 = vadd.f32 %v305_v4, %v303_v3  ;;  %v309_v8 = vmul.f32 %v478_v2, %v308_v6  ;;  %v312_v11 = vstv %s482_s4  ;;  %s488_s29 = sld [smem:[#allocation3 + $0x83]] }
  0x21   : > { %v313_v12 = vmul.f32 %v479_v7, %v312_v11  ;;  %v316_v13 = vstv %s483_s23  ;;  %s320_s30 = sld [smem:[#allocation7]] }
  0x22   : > { %v310_v10 = vadd.f32 %v309_v8, %v306_v5  ;;  %v317_v14 = vmul.f32 %v480_v9, %v316_v13  ;;  %v324_v16 = vstv %s484_s24  ;;  %s489_s6 = sld [smem:[#allocation7 + $0x1]] }
  0x23   : > { %v325_v17 = vmul.f32 %v324_v16, %v294_v0  ;;  %v327_v18 = vstv %s485_s25  ;;  %s346_s7 = sld [smem:[#allocation2]] }
  0x24   : > { %v314_v15 = vadd.f32 %v313_v12, %v310_v10  ;;  %v330_v19 = vstv %s486_s26 }
  0x25   : > { %v328_v21 = vadd.f32 %v327_v18, %v325_v17  ;;  %v331_v22 = vmul.f32 %v478_v2, %v330_v19  ;;  %v334_v23 = vstv %s487_s27 }
  0x26   : > { %v318_v20 = vadd.f32 %v317_v14, %v314_v15  ;;  %v335_v24 = vmul.f32 %v479_v7, %v334_v23  ;;  %v338_v25 = vstv %s488_s29 }
  0x27   : > { %v332_v26 = vadd.f32 %v331_v22, %v328_v21  ;;  %v339_v27 = vmul.f32 %v480_v9, %v338_v25  ;;  %v321_v30 = vstv %s320_s30 }
  0x28   : > { %v319_v28 = vmax.f32 %v318_v20, 0.0  ;;  %v343_v32 = vstv %s489_s6 }
  0x29   : > { %v336_v29 = vadd.f32 %v335_v24, %v332_v26  ;;  %v347_v36 = vstv %s346_s7 }
  0x2a   : > { %v322_v33 = vmul.f32 %v321_v30, %v319_v28 }
  0x2b   : > { %v340_v31 = vadd.f32 %v339_v27, %v336_v29 }
  0x2d   : > { %v341_v34 = vmax.f32 %v340_v31, 0.0 }
  0x2f   : > { %v344_v35 = vmul.f32 %v343_v32, %v341_v34 }
  0x31   : > { %v345_v37 = vadd.f32 %v344_v35, %v322_v33 }
  0x33   : > { %v348_v38 = vadd.f32 %v347_v36, %v345_v37 }
  0x35   : > { %v349_v39 = vsub.f32 0.0, %v348_v38 }
  0x37   : > { %v350_v40 = vmul.f32 1.442695, %v349_v39 }
  0x39   : > { %548 = vpow2.f32 %v350_v40 }
  0x3f   : > { %v549_v41 = vpop.eup %548 }
  0x40   : > { %v352_v42 = vadd.f32 1.0, %v549_v41 }
  0x42   : > { %550 = vrcp.f32 %v352_v42 }
  0x48   : > { %v551_v43 = vpop.eup %550 }
  0x49   : > { %354 = vst [vmem:[%s293_s11] sm:$0xff] %v551_v43 }
  0x4a PF: > { %s18_s22 = sadd.s32 1, %s627_s22   ;;  %s746_s20 = smov %s623_s21 }
  0x4b   : > { %p15_p8 = scmp.ge.s32.totalorder %s18_s22, 4   ;;  %s747_s21 = smov %s749_s28 }
  0x4d   :  { %17 = sbr.rel (!%p15_p8) target bundleno = 5 (0x5), region = 86 }
  0x52   :  { %380 = vsyncpa [#allocation4], 1 }
  0x53   :  { %382 = vsyncpa [#allocation4 + $0x1], 1 }
  0x54   :  { %383 = vsyncpa [#allocation6], 1 }

</bundles_post_ra>
